<compile_context>
chip_gen: v5e
topology: v5e:2x2
jax: 0.10.0
libtpu: 0.0.40
codegen_flags: <defaults>
</compile_context>

<pallas_src>
import jax
import jax.numpy as jnp
from jax.experimental import pallas as pl
from jax.experimental.pallas import tpu as pltpu

_LANE = 128


def _round_up(n, m):
    return (n + m - 1) // m * m


def _qmlp_kernel(x_ref, w1_ref, b1_ref, w2_ref, b2_ref, w3_ref, b3_ref,
                 w4_ref, b4_ref, out_ref):
    """One batch tile: 4 bf16 MXU matmuls with f32 accumulation, ReLU between."""
    x = x_ref[...]                                                    # (TB, in_f) bf16

    h1 = jnp.dot(x, w1_ref[...], preferred_element_type=jnp.float32) + b1_ref[...]
    h1 = jnp.maximum(h1, 0.0).astype(jnp.bfloat16)                    # (TB, 256)

    h2 = jnp.dot(h1, w2_ref[...], preferred_element_type=jnp.float32) + b2_ref[...]
    h2 = jnp.maximum(h2, 0.0).astype(jnp.bfloat16)                    # (TB, 128)

    h3 = jnp.dot(h2, w3_ref[...], preferred_element_type=jnp.float32) + b3_ref[...]
    h3 = jnp.maximum(h3, 0.0).astype(jnp.bfloat16)                    # (TB, 128) [64 real + 64 zero pad]

    h4 = jnp.dot(h3, w4_ref[...], preferred_element_type=jnp.float32) + b4_ref[...]
    out_ref[...] = h4.astype(out_ref.dtype)                           # (TB, 128) lane-dense store


@jax.jit
def qmlp_forward(x, params):
    """x: (B, in_features) f32; params: {w1..w4 (fan_in, fan_out), b1..b4 (1, fan_out)} f32."""
    B, in_f = x.shape
    n_actions = params["w4"].shape[1]

    h3_pad = _round_up(64, _LANE)               # 128
    out_pad = _round_up(n_actions, _LANE)       # 128 for small action spaces

    # bf16 weights (padded to lane-dense widths); biases stay f32.
    w1 = params["w1"].astype(jnp.bfloat16)                                         # (in_f, 256)
    w2 = params["w2"].astype(jnp.bfloat16)                                         # (256, 128)
    w3 = jnp.pad(params["w3"], ((0, 0), (0, h3_pad - 64))).astype(jnp.bfloat16)    # (128, 128)
    w4 = jnp.pad(params["w4"], ((0, h3_pad - 64), (0, out_pad - n_actions))
                 ).astype(jnp.bfloat16)                                            # (128, 128)
    b1 = params["b1"]
    b2 = params["b2"]
    b3 = jnp.pad(params["b3"], ((0, 0), (0, h3_pad - 64)))
    b4 = jnp.pad(params["b4"], ((0, 0), (0, out_pad - n_actions)))

    # Batch tile: 512 rows pipelines near the HBM roofline; smaller batches use one tile.
    TB = min(512, _round_up(B, 8))
    B_pad = _round_up(B, TB)
    x_p = jnp.pad(x, ((0, B_pad - B), (0, 0))).astype(jnp.bfloat16)

    def resident(shape):
        # Same block index for every grid step -> stays in VMEM, no re-DMA.
        return pl.BlockSpec(shape, lambda i: (0, 0))

    out = pl.pallas_call(
        _qmlp_kernel,
        out_shape=jax.ShapeDtypeStruct((B_pad, out_pad), jnp.float32),
        grid=(B_pad // TB,),
        in_specs=[
            pl.BlockSpec((TB, in_f), lambda i: (i, 0)),   # x: pipelined batch tiles
            resident(w1.shape), resident(b1.shape),
            resident(w2.shape), resident(b2.shape),
            resident(w3.shape), resident(b3.shape),
            resident(w4.shape), resident(b4.shape),
        ],
        out_specs=pl.BlockSpec((TB, out_pad), lambda i: (i, 0)),
        compiler_params=pltpu.CompilerParams(
            dimension_semantics=("parallel",),            # v7x: split tiles across 2 TCs
            vmem_limit_bytes=64 * 1024 * 1024,
        ),
    )(x_p, w1, b1, w2, b2, w3, b3, w4, b4)

    return out[:B, :n_actions]


def init_qmlp_params(key, in_features, n_actions):
    """PyTorch nn.Linear default init: U[-1/sqrt(fan_in), 1/sqrt(fan_in)]."""
    dims = [in_features, 256, 128, 64, n_actions]
    params = {}
    for i in range(4):
        fan_in, fan_out = dims[i], dims[i + 1]
        key, kw, kb = jax.random.split(key, 3)
        bound = 1.0 / jnp.sqrt(jnp.float32(fan_in))
        # Stored as (fan_in, fan_out): transpose of PyTorch's (out, in) layout.
        params[f"w{i+1}"] = jax.random.uniform(
            kw, (fan_in, fan_out), jnp.float32, minval=-bound, maxval=bound)
        params[f"b{i+1}"] = jax.random.uniform(
            kb, (1, fan_out), jnp.float32, minval=-bound, maxval=bound)
    return params


def qmlp_reference(x, params, mxu_dtype=jnp.float32):
    """Plain-JAX reference (optionally with bf16-quantized MXU inputs)."""
    def layer(h, w, b, relu):
        y = jnp.dot(h.astype(mxu_dtype), w.astype(mxu_dtype),
                    preferred_element_type=jnp.float32) + b
        return jnp.maximum(y, 0.0) if relu else y
    h = layer(x, params["w1"], params["b1"], True)
    h = layer(h, params["w2"], params["b2"], True)
    h = layer(h, params["w3"], params["b3"], True)
    return layer(h, params["w4"], params["b4"], False)


if __name__ == "__main__":
    key = jax.random.PRNGKey(0)
    k_params, k_x = jax.random.split(key)

    batch = 8
    in_features = 32   # the PyTorch module references a global `in_features`; chosen here
    n_actions = 4

    params = init_qmlp_params(k_params, in_features, n_actions)
    x = jax.random.normal(k_x, (batch, in_features), jnp.float32)

    out = jax.block_until_ready(qmlp_forward(x, params))
    assert out.shape == (batch, n_actions)

    # Tight check vs a bf16-quantized reference (same MXU precision path).
    ref_bf16 = qmlp_reference(x, params, mxu_dtype=jnp.bfloat16)
    assert jnp.allclose(out, ref_bf16, atol=1e-3, rtol=1e-3)

    # Relaxed check vs the full-f32 reference (bf16 quantization error budget).
    ref_f32 = qmlp_reference(x, params, mxu_dtype=jnp.float32)
    assert jnp.allclose(out, ref_f32, atol=5e-2, rtol=5e-2)

    print("KERNEL_OK")
</pallas_src>

<mosaic_0001>
module attributes {stable_mosaic.version = 11 : i64} {
  func.func @_qmlp_kernel(%arg0: i32, %arg1: memref<8x32xbf16, #tpu.memory_space<vmem>>, %arg2: memref<32x256xbf16, #tpu.memory_space<vmem>>, %arg3: memref<1x256xf32, #tpu.memory_space<vmem>>, %arg4: memref<256x128xbf16, #tpu.memory_space<vmem>>, %arg5: memref<1x128xf32, #tpu.memory_space<vmem>>, %arg6: memref<128x128xbf16, #tpu.memory_space<vmem>>, %arg7: memref<1x128xf32, #tpu.memory_space<vmem>>, %arg8: memref<128x128xbf16, #tpu.memory_space<vmem>>, %arg9: memref<1x128xf32, #tpu.memory_space<vmem>>, %arg10: memref<8x128xf32, #tpu.memory_space<vmem>>) attributes {dimension_semantics = [#tpu.dimension_semantics<parallel>], iteration_bounds = array<i64: 1>, scalar_prefetch = 0 : i64, scratch_operands = 0 : i64, tpu.core_type = #tpu.core_type<tc>, window_params = [{transform_indices = @transform_0, window_bounds = array<i64: 8, 32>}, {pipeline_mode = #tpu.pipeline_mode<synchronous>, transform_indices = @transform_1, window_bounds = array<i64: 32, 256>}, {pipeline_mode = #tpu.pipeline_mode<synchronous>, transform_indices = @transform_2, window_bounds = array<i64: 1, 256>}, {pipeline_mode = #tpu.pipeline_mode<synchronous>, transform_indices = @transform_3, window_bounds = array<i64: 256, 128>}, {pipeline_mode = #tpu.pipeline_mode<synchronous>, transform_indices = @transform_4, window_bounds = array<i64: 1, 128>}, {pipeline_mode = #tpu.pipeline_mode<synchronous>, transform_indices = @transform_5, window_bounds = array<i64: 128, 128>}, {pipeline_mode = #tpu.pipeline_mode<synchronous>, transform_indices = @transform_6, window_bounds = array<i64: 1, 128>}, {pipeline_mode = #tpu.pipeline_mode<synchronous>, transform_indices = @transform_7, window_bounds = array<i64: 128, 128>}, {pipeline_mode = #tpu.pipeline_mode<synchronous>, transform_indices = @transform_8, window_bounds = array<i64: 1, 128>}, {transform_indices = @transform_9, window_bounds = array<i64: 8, 128>}]} {
    %c0 = arith.constant 0 : index
    %c0_0 = arith.constant 0 : index
    %0 = vector.load %arg1[%c0, %c0_0] : memref<8x32xbf16, #tpu.memory_space<vmem>>, vector<8x32xbf16>
    %c0_1 = arith.constant 0 : index
    %c0_2 = arith.constant 0 : index
    %1 = vector.load %arg2[%c0_1, %c0_2] : memref<32x256xbf16, #tpu.memory_space<vmem>>, vector<32x256xbf16>
    %cst = arith.constant dense<0.000000e+00> : vector<8x256xf32>
    %2 = tpu.matmul %0, %1, %cst {dimension_numbers = #tpu.dot_dimension_numbers<[1], [0], [0], [1], [0, 0, 1, 1], [], []>} : vector<8x32xbf16>, vector<32x256xbf16>, vector<8x256xf32> -> vector<8x256xf32>
    %c0_3 = arith.constant 0 : index
    %c0_4 = arith.constant 0 : index
    %3 = vector.load %arg3[%c0_3, %c0_4] : memref<1x256xf32, #tpu.memory_space<vmem>>, vector<1x256xf32>
    %4 = vector.broadcast %3 : vector<1x256xf32> to vector<8x256xf32>
    %5 = arith.addf %2, %4 : vector<8x256xf32>
    %cst_5 = arith.constant 0.000000e+00 : f32
    %6 = vector.broadcast %cst_5 : f32 to vector<8x256xf32>
    %7 = arith.maximumf %5, %6 : vector<8x256xf32>
    %8 = arith.truncf %7 : vector<8x256xf32> to vector<8x256xbf16>
    %c0_6 = arith.constant 0 : index
    %c0_7 = arith.constant 0 : index
    %9 = vector.load %arg4[%c0_6, %c0_7] : memref<256x128xbf16, #tpu.memory_space<vmem>>, vector<256x128xbf16>
    %cst_8 = arith.constant dense<0.000000e+00> : vector<8x128xf32>
    %10 = tpu.matmul %8, %9, %cst_8 {dimension_numbers = #tpu.dot_dimension_numbers<[1], [0], [0], [1], [0, 0, 1, 1], [], []>} : vector<8x256xbf16>, vector<256x128xbf16>, vector<8x128xf32> -> vector<8x128xf32>
    %c0_9 = arith.constant 0 : index
    %c0_10 = arith.constant 0 : index
    %11 = vector.load %arg5[%c0_9, %c0_10] : memref<1x128xf32, #tpu.memory_space<vmem>>, vector<1x128xf32>
    %12 = vector.broadcast %11 : vector<1x128xf32> to vector<8x128xf32>
    %13 = arith.addf %10, %12 : vector<8x128xf32>
    %cst_11 = arith.constant 0.000000e+00 : f32
    %14 = vector.broadcast %cst_11 : f32 to vector<8x128xf32>
    %15 = arith.maximumf %13, %14 : vector<8x128xf32>
    %16 = arith.truncf %15 : vector<8x128xf32> to vector<8x128xbf16>
    %c0_12 = arith.constant 0 : index
    %c0_13 = arith.constant 0 : index
    %17 = vector.load %arg6[%c0_12, %c0_13] : memref<128x128xbf16, #tpu.memory_space<vmem>>, vector<128x128xbf16>
    %cst_14 = arith.constant dense<0.000000e+00> : vector<8x128xf32>
    %18 = tpu.matmul %16, %17, %cst_14 {dimension_numbers = #tpu.dot_dimension_numbers<[1], [0], [0], [1], [0, 0, 1, 1], [], []>} : vector<8x128xbf16>, vector<128x128xbf16>, vector<8x128xf32> -> vector<8x128xf32>
    %c0_15 = arith.constant 0 : index
    %c0_16 = arith.constant 0 : index
    %19 = vector.load %arg7[%c0_15, %c0_16] : memref<1x128xf32, #tpu.memory_space<vmem>>, vector<1x128xf32>
    %20 = vector.broadcast %19 : vector<1x128xf32> to vector<8x128xf32>
    %21 = arith.addf %18, %20 : vector<8x128xf32>
    %cst_17 = arith.constant 0.000000e+00 : f32
    %22 = vector.broadcast %cst_17 : f32 to vector<8x128xf32>
    %23 = arith.maximumf %21, %22 : vector<8x128xf32>
    %24 = arith.truncf %23 : vector<8x128xf32> to vector<8x128xbf16>
    %c0_18 = arith.constant 0 : index
    %c0_19 = arith.constant 0 : index
    %25 = vector.load %arg8[%c0_18, %c0_19] : memref<128x128xbf16, #tpu.memory_space<vmem>>, vector<128x128xbf16>
    %cst_20 = arith.constant dense<0.000000e+00> : vector<8x128xf32>
    %26 = tpu.matmul %24, %25, %cst_20 {dimension_numbers = #tpu.dot_dimension_numbers<[1], [0], [0], [1], [0, 0, 1, 1], [], []>} : vector<8x128xbf16>, vector<128x128xbf16>, vector<8x128xf32> -> vector<8x128xf32>
    %c0_21 = arith.constant 0 : index
    %c0_22 = arith.constant 0 : index
    %27 = vector.load %arg9[%c0_21, %c0_22] : memref<1x128xf32, #tpu.memory_space<vmem>>, vector<1x128xf32>
    %28 = vector.broadcast %27 : vector<1x128xf32> to vector<8x128xf32>
    %29 = arith.addf %26, %28 : vector<8x128xf32>
    %c0_23 = arith.constant 0 : index
    %c0_24 = arith.constant 0 : index
    %30 = vector.load %arg10[%c0_23, %c0_24] : memref<8x128xf32, #tpu.memory_space<vmem>>, vector<8x128xf32>
    tpu.vector_store %arg10[%c0_23, %c0_24], %29 {strides = array<i32>} : memref<8x128xf32, #tpu.memory_space<vmem>>, vector<8x128xf32>,
    return
  }
  func.func @transform_0(%arg0: i32) -> (i32, i32) {
    %c0_i32 = arith.constant 0 : i32
    %c0_i32_0 = arith.constant 0 : i32
    return %arg0, %c0_i32 : i32, i32
  }
  func.func @transform_1(%arg0: i32) -> (i32, i32) {
    %c0_i32 = arith.constant 0 : i32
    %c0_i32_0 = arith.constant 0 : i32
    %c0_i32_1 = arith.constant 0 : i32
    return %c0_i32, %c0_i32_0 : i32, i32
  }
  func.func @transform_2(%arg0: i32) -> (i32, i32) {
    %c0_i32 = arith.constant 0 : i32
    %c0_i32_0 = arith.constant 0 : i32
    %c0_i32_1 = arith.constant 0 : i32
    return %c0_i32, %c0_i32_0 : i32, i32
  }
  func.func @transform_3(%arg0: i32) -> (i32, i32) {
    %c0_i32 = arith.constant 0 : i32
    %c0_i32_0 = arith.constant 0 : i32
    %c0_i32_1 = arith.constant 0 : i32
    return %c0_i32, %c0_i32_0 : i32, i32
  }
  func.func @transform_4(%arg0: i32) -> (i32, i32) {
    %c0_i32 = arith.constant 0 : i32
    %c0_i32_0 = arith.constant 0 : i32
    %c0_i32_1 = arith.constant 0 : i32
    return %c0_i32, %c0_i32_0 : i32, i32
  }
  func.func @transform_5(%arg0: i32) -> (i32, i32) {
    %c0_i32 = arith.constant 0 : i32
    %c0_i32_0 = arith.constant 0 : i32
    %c0_i32_1 = arith.constant 0 : i32
    return %c0_i32, %c0_i32_0 : i32, i32
  }
  func.func @transform_6(%arg0: i32) -> (i32, i32) {
    %c0_i32 = arith.constant 0 : i32
    %c0_i32_0 = arith.constant 0 : i32
    %c0_i32_1 = arith.constant 0 : i32
    return %c0_i32, %c0_i32_0 : i32, i32
  }
  func.func @transform_7(%arg0: i32) -> (i32, i32) {
    %c0_i32 = arith.constant 0 : i32
    %c0_i32_0 = arith.constant 0 : i32
    %c0_i32_1 = arith.constant 0 : i32
    return %c0_i32, %c0_i32_0 : i32, i32
  }
  func.func @transform_8(%arg0: i32) -> (i32, i32) {
    %c0_i32 = arith.constant 0 : i32
    %c0_i32_0 = arith.constant 0 : i32
    %c0_i32_1 = arith.constant 0 : i32
    return %c0_i32, %c0_i32_0 : i32, i32
  }
  func.func @transform_9(%arg0: i32) -> (i32, i32) {
    %c0_i32 = arith.constant 0 : i32
    %c0_i32_0 = arith.constant 0 : i32
    return %arg0, %c0_i32 : i32, i32
  }
}

</mosaic_0001>

<bundles_post_ra>
// kernel: qmlp_forward.1
= control target key start
LH: loop header
LB: loop body
LE: loop exit
PB: predicated region body
PF: predicated region fallthrough
CT: control target
= control target key end

     0   :  { %vm64_vm0 = vcmask 261120   ;;  %s800_s1 = inlined_call_operand.vmem [shape: bf16[32,256], index: 1, kind: input, shape index: {}]   ;;  %s801_s3 = inlined_call_operand.vmem [shape: bf16[256,128], index: 3, kind: input, shape index: {}]   ;;  %s802_s0 = inlined_call_operand.vmem [shape: bf16[8,32], index: 0, kind: input, shape index: {}]   ;;  %s803_s4 = inlined_call_operand.vmem [shape: f32[1,128], index: 4, kind: input, shape index: {}]   ;;  %s804_s5 = inlined_call_operand.vmem [shape: bf16[128,128], index: 5, kind: input, shape index: {}]   ;;  %s805_s2 = inlined_call_operand.vmem [shape: f32[1,256], index: 2, kind: input, shape index: {}]   ;;  %s806_s6 = inlined_call_operand.vmem [shape: f32[1,128], index: 6, kind: input, shape index: {}]   ;;  %s807_s7 = inlined_call_operand.vmem [shape: bf16[128,128], index: 7, kind: input, shape index: {}]   ;;  %s808_s8 = inlined_call_operand.vmem [shape: f32[1,128], index: 8, kind: input, shape index: {}]   ;;  %s809_s9 = inlined_call_operand.vmem [shape: f32[8,128], index: 9, kind: output, shape index: {}]  }
   0x1   :  { %v437_v0 = vld [vmem:[%s800_s1 + $0x10] sm:$0xf]  ;;  %v576_v1 = vld [vmem:[%s800_s1 + $0x14] sm:$0xf0]  ;;  %v575_v2 = vld [vmem:[%s800_s1 + $0x14] sm:$0xf] }
   0x2   :  { %v438_v3 = vor.u32 %v576_v1, %v437_v0  ;;  %v439_v4 = vld [vmem:[%s800_s1 + $0x18] sm:$0xf0]  ;;  %v429_v5 = vld [vmem:[%s800_s1] sm:$0xf]  ;;  %v574_v6 = vld [vmem:[%s800_s1 + $0x4] sm:$0xf0] }
   0x3   :  { %v442_v7 = vor.u32 %v575_v2, %v439_v4  ;;  %v573_v8 = vld [vmem:[%s800_s1 + $0x4] sm:$0xf]  ;;  %v431_v9 = vld [vmem:[%s800_s1 + $0x8] sm:$0xf0]  ;;  %v430_v10 = vor.u32 %v574_v6, %v429_v5  ;;  %v584_v11 = vld [vmem:[%s801_s3 + $0x38] sm:$0xff] }
   0x4   :  { %74 = vmatpush.bf16.msra.mxu0 %v438_v3  ;;  %v592_v12 = vld [vmem:[%s801_s3 + $0x78] sm:$0xff]  ;;  %v434_v13 = vor.u32 %v573_v8, %v431_v9  ;;  %230 = vmatpush.bf16.msra.mxu2 %v584_v11  ;;  %v583_v14 = vld [vmem:[%s801_s3 + $0x30] sm:$0xff]  ;;  %v33_v16 = vld [vmem:[%s802_s0] sm:$0xf] }
   0x5   :  { %87 = vmatpush.bf16.msra.mxu1 %v442_v7  ;;  %243 = vmatpush.bf16.msra.mxu3 %v592_v12  ;;  %v591_v15 = vld [vmem:[%s801_s3 + $0x70] sm:$0xff]  ;;  %v582_v17 = vld [vmem:[%s801_s3 + $0x28] sm:$0xff]  ;;  %v581_v19 = vld [vmem:[%s801_s3 + $0x20] sm:$0xff] }
   0x6   :  { %v590_v18 = vld [vmem:[%s801_s3 + $0x68] sm:$0xff]  ;;  %v589_v20 = vld [vmem:[%s801_s3 + $0x60] sm:$0xff]  ;;  %v580_v21 = vld [vmem:[%s801_s3 + $0x18] sm:$0xff] }
   0x7   :  { %v588_v22 = vld [vmem:[%s801_s3 + $0x58] sm:$0xff]  ;;  %v579_v23 = vld [vmem:[%s801_s3 + $0x10] sm:$0xff]  ;;  %v578_v25 = vld [vmem:[%s801_s3 + $0x8] sm:$0xff] }
   0x8   :  { %75 = vmatpush.bf16.msra.mxu0 %v430_v10  ;;  %231 = vmatpush.bf16.msra.mxu2 %v583_v14  ;;  %v587_v24 = vld [vmem:[%s801_s3 + $0x50] sm:$0xff]  ;;  %v586_v26 = vld [vmem:[%s801_s3 + $0x48] sm:$0xff]  ;;  %v577_v27 = vld [vmem:[%s801_s3] sm:$0xff] }
   0x9   :  { %88 = vmatpush.bf16.msra.mxu1 %v434_v13  ;;  %244 = vmatpush.bf16.msra.mxu3 %v591_v15  ;;  %v585_v28 = vld [vmem:[%s801_s3 + $0x40] sm:$0xff]  ;;  %v600_v29 = vld [vmem:[%s804_s5 + $0x38] sm:$0xff]  ;;  %v599_v30 = vld [vmem:[%s804_s5 + $0x30] sm:$0xff] }
   0xa   :  { %v598_v31 = vld [vmem:[%s804_s5 + $0x28] sm:$0xff]  ;;  %v597_v32 = vld [vmem:[%s804_s5 + $0x20] sm:$0xff]  ;;  %v596_v33 = vld [vmem:[%s804_s5 + $0x18] sm:$0xff] }
   0xb   :  { %443 = vmatmul.msk.bf16.vlgmr.msra.gmra.mxu0 %vm64_vm0, %v33_v16  ;;  %v38_v34 = vld [vmem:[%s805_s2] sm:$0x3]  ;;  %v595_v35 = vld [vmem:[%s804_s5 + $0x10] sm:$0xff]  ;;  %v594_v48 = vld [vmem:[%s804_s5 + $0x8] sm:$0xff] }
   0xc   :  { %444 = vmatmul.msk.bf16.vlgmr.msra.gmra.mxu1 %vm64_vm0, %v33_v16  ;;  %232 = vmatpush.bf16.msra.mxu2 %v582_v17  ;;  %v40_v36 = vperm.slane %v38_v34, 0  ;;  %v41_v37 = vperm.slane %v38_v34, 1  ;;  %v593_v49 = vld [vmem:[%s804_s5] sm:$0xff]  ;;  %v608_v50 = vld [vmem:[%s807_s7 + $0x38] sm:$0xff]  ;;  %v607_v51 = vld [vmem:[%s807_s7 + $0x30] sm:$0xff] }
   0xd   :  { %245 = vmatpush.bf16.msra.mxu3 %v590_v18  ;;  %326 = vmatpush.bf16.msrb.mxu0 %v600_v29  ;;  %v606_v52 = vld [vmem:[%s807_s7 + $0x28] sm:$0xff]  ;;  %v605_v53 = vld [vmem:[%s807_s7 + $0x20] sm:$0xff]  ;;  %v604_v54 = vld [vmem:[%s807_s7 + $0x18] sm:$0xff] }
   0xe   :  { %409 = vmatpush.bf16.msrb.mxu1 %v608_v50  ;;  %v603_v55 = vld [vmem:[%s807_s7 + $0x10] sm:$0xff]  ;;  %v609_v56 = vld [vmem:[%s803_s4] ss:$0 sm:$0xff]  ;;  %v602_v1 = vld [vmem:[%s807_s7 + $0x8] sm:$0xff] }
   0xf   :  { %v601_v2 = vld [vmem:[%s807_s7] sm:$0xff] }
  0x10   :  { %233 = vmatpush.bf16.msra.mxu2 %v581_v19  ;;  %v610_v3 = vld [vmem:[%s806_s6] ss:$0 sm:$0xff] }
  0x11   :  { %246 = vmatpush.bf16.msra.mxu3 %v589_v20  ;;  %327 = vmatpush.bf16.msrb.mxu0 %v599_v30  ;;  %v611_v9 = vld [vmem:[%s808_s8] ss:$0 sm:$0xff] }
  0x12   :  { %410 = vmatpush.bf16.msrb.mxu1 %v607_v51 }
  0x14   :  { %234 = vmatpush.bf16.msra.mxu2 %v580_v21 }
  0x15   :  { %247 = vmatpush.bf16.msra.mxu3 %v588_v22  ;;  %328 = vmatpush.bf16.msrb.mxu0 %v598_v31 }
  0x16   :  { %411 = vmatpush.bf16.msrb.mxu1 %v606_v52 }
  0x18   :  { %235 = vmatpush.bf16.msra.mxu2 %v579_v23 }
  0x19   :  { %248 = vmatpush.bf16.msra.mxu3 %v587_v24  ;;  %329 = vmatpush.bf16.msrb.mxu0 %v597_v32 }
  0x1a   :  { %412 = vmatpush.bf16.msrb.mxu1 %v605_v53 }
  0x1c   :  { %236 = vmatpush.bf16.msra.mxu2 %v578_v25 }
  0x1d   :  { %249 = vmatpush.bf16.msra.mxu3 %v586_v26  ;;  %330 = vmatpush.bf16.msrb.mxu0 %v596_v33 }
  0x1e   :  { %413 = vmatpush.bf16.msrb.mxu1 %v604_v54 }
  0x20   :  { %237 = vmatpush.bf16.msra.mxu2 %v577_v27 }
  0x21   :  { %250 = vmatpush.bf16.msra.mxu3 %v585_v28  ;;  %331 = vmatpush.bf16.msrb.mxu0 %v595_v35 }
  0x22   :  { %414 = vmatpush.bf16.msrb.mxu1 %v603_v55 }
  0x25   :  { %332 = vmatpush.bf16.msrb.mxu0 %v594_v48 }
  0x26   :  { %415 = vmatpush.bf16.msrb.mxu1 %v602_v1 }
  0x29   :  { %333 = vmatpush.bf16.msrb.mxu0 %v593_v49 }
  0x2a   :  { %416 = vmatpush.bf16.msrb.mxu1 %v601_v2 }
  0x88   :  { %v77_v38 = vpop.f32.mrf.mxu0 }
  0x89   :  { %v78_v39 = vadd.f32 %v77_v38, %v40_v36  ;;  %v90_v40 = vpop.f32.mrf.mxu1 }
  0x8a   :  { %v91_v41 = vadd.f32 %v90_v40, %v41_v37 }
  0x8b   :  { %v94_v42 = vmax.f32 %v78_v39, 0.0 }
  0x8c   :  { %v95_v43 = vmax.f32 %v91_v41, 0.0 }
  0x8d   :  { %v96_v44 = vpack.c.bf16 %v94_v42, %v94_v42 }
  0x8e   :  { %v97_v45 = vpack.c.bf16 %v95_v43, %v95_v43 }
  0x8f   :  { %238 = vmatmul.bf16.vlgmr.msra.gmra.mxu2 %v96_v44 }
  0x90   :  { %251 = vmatmul.bf16.vlgmr.msra.gmra.mxu3 %v97_v45  ;;  %v79_v46 = vpop.f32.mrf.mxu0 }
  0x91   :  { %v92_v47 = vpop.f32.mrf.mxu1 }
 0x112   :  { %v239_v57 = vpop.f32.mrf.mxu2 }
 0x113   :  { %v240_v58 = vadd.f32 %v609_v56, %v239_v57  ;;  %v252_v59 = vpop.f32.mrf.mxu3 }
 0x115   :  { %v253_v60 = vadd.f32 %v252_v59, %v240_v58 }
 0x117   :  { %v256_v61 = vmax.f32 %v253_v60, 0.0 }
 0x119   :  { %v257_v62 = vpack.c.bf16 %v256_v61, %v256_v61 }
 0x11a   :  { %v241_v63 = vpop.f32.mrf.mxu2 }
 0x11b   :  { %v254_v0 = vpop.f32.mrf.mxu3  ;;  %334 = vmatmul.bf16.vlgmr.msrb.gmra.mxu0 %v257_v62 }
 0x198   :  { %v335_v4 = vpop.f32.mrf.mxu0 }
 0x199   :  { %v336_v5 = vadd.f32 %v610_v3, %v335_v4 }
 0x19b   :  { %v339_v6 = vmax.f32 %v336_v5, 0.0 }
 0x19d   :  { %v340_v7 = vpack.c.bf16 %v339_v6, %v339_v6 }
 0x19f   :  { %417 = vmatmul.bf16.vlgmr.msrb.gmra.mxu1 %v340_v7 }
 0x1a0   :  { %v337_v8 = vpop.f32.mrf.mxu0 }
 0x21c   :  { %v418_v10 = vpop.f32.mrf.mxu1 }
 0x21d   :  { %v419_v11 = vadd.f32 %v611_v9, %v418_v10 }
 0x21f   :  { %422 = vst [vmem:[%s809_s9] sm:$0xff] %v419_v11 }
 0x224   :  { %v420_v12 = vpop.f32.mrf.mxu1 }

</bundles_post_ra>
